<compile_context>
chip_gen: v5e
topology: v5e:2x2
jax: 0.10.0
libtpu: 0.0.40
codegen_flags: <defaults>
</compile_context>

<pallas_src>
import jax
import jax.numpy as jnp
from jax import lax
from jax.experimental import pallas as pl
from jax.experimental.pallas import tpu as pltpu


def _round_up(x, m):
    return ((x + m - 1) // m) * m


# Batch-tile cap: x tile (TB x Kp bf16) double-buffered + f32 activations stay
# well inside v7x's 64 MiB VMEM while amortizing the ~0.35 us/step grid overhead.
_TB_MAX = 2048


# ----------------------------------------------------------------------------
# Pallas kernel: fused 4-layer MLP
# ----------------------------------------------------------------------------
def _mlp_kernel(x_ref,
                w1_ref, b1_ref,
                w2_ref, b2_ref,
                w3_ref, b3_ref,
                w4_ref, b4_ref,
                o_ref):
    x = x_ref[...]                                            # (TB, Kp) bf16

    h = jnp.dot(x, w1_ref[...], preferred_element_type=jnp.float32) + b1_ref[...]
    h = jnp.maximum(h, 0.0)                                   # ReLU, f32 (TB, 128)

    h = jnp.dot(h.astype(jnp.bfloat16), w2_ref[...],
                preferred_element_type=jnp.float32) + b2_ref[...]
    h = jnp.maximum(h, 0.0)                                   # ReLU, f32 (TB, 64)

    h = jnp.dot(h.astype(jnp.bfloat16), w3_ref[...],
                preferred_element_type=jnp.float32) + b3_ref[...]
    h = jnp.maximum(h, 0.0)                                   # ReLU, f32 (TB, 32)

    # fc4 (32 -> 1): contract w4 (1, 32) against h (TB, 32) on their last dims
    # (a trans_b matmul).  This produces the result directly as a lane-dense
    # (1, TB) slab -> unmasked vector stores, no N=1 matmul, no transpose.
    logits = lax.dot_general(
        w4_ref[...], h.astype(jnp.bfloat16),
        dimension_numbers=(((1,), (1,)), ((), ())),
        preferred_element_type=jnp.float32)                   # (1, TB) f32
    o_ref[...] = jax.nn.sigmoid(logits + b4_ref[...])         # sigmoid in f32


# ----------------------------------------------------------------------------
# Wrapper: pad, tile over batch, call the kernel
# ----------------------------------------------------------------------------
@jax.jit
def mlp_forward(embedded, params):
    """embedded: (B, embed_len) f32 -> (B, 1) f32"""
    w1, b1, w2, b2, w3, b3, w4, b4 = params
    B, K = embedded.shape
    Kp = w1.shape[0]                      # K already zero-padded to 128 in w1

    TB = min(_TB_MAX, _round_up(max(B, 1), 128))
    B_pad = _round_up(B, TB)

    # Pad batch to a multiple of TB and features to Kp (both with zeros; the
    # extra W1 rows are zero too, so padded columns contribute nothing).
    x = jnp.zeros((B_pad, Kp), jnp.bfloat16)
    x = x.at[:B, :K].set(embedded.astype(jnp.bfloat16))

    def resident(shape):
        # Constant index_map: fetched once, stays resident in VMEM across tiles.
        return pl.BlockSpec(shape, lambda i: (0, 0))

    out = pl.pallas_call(
        _mlp_kernel,
        out_shape=jax.ShapeDtypeStruct((1, B_pad), jnp.float32),
        grid=(B_pad // TB,),
        in_specs=[
            pl.BlockSpec((TB, Kp), lambda i: (i, 0)),         # batch-tiled x
            resident(w1.shape), resident(b1.shape),
            resident(w2.shape), resident(b2.shape),
            resident(w3.shape), resident(b3.shape),
            resident(w4.shape), resident(b4.shape),
        ],
        out_specs=pl.BlockSpec((1, TB), lambda i: (0, i)),    # lane-dense output
        compiler_params=pltpu.CompilerParams(
            dimension_semantics=("parallel",),                # v7x: 2 TCs
            vmem_limit_bytes=32 * 1024 * 1024,
        ),
    )(x, w1, b1, w2, b2, w3, b3, w4, b4)

    return out[0, :B].reshape(B, 1)


# ----------------------------------------------------------------------------
# ParameterEmbeddingNet in JAX (preprocessing glue + Pallas MLP)
# ----------------------------------------------------------------------------
class ParameterEmbeddingNetPallas:
    def __init__(self, template_id, preprocessing_infos, embed_dim=16, key=None):
        self.id = template_id
        self.embed_dim = embed_dim
        self.infos = preprocessing_infos
        if key is None:
            key = jax.random.PRNGKey(0)

        # ----- per-column embedding layers (deterministic init) -----
        self.embed_tables = []   # per column: ("one_hot", n) | ("identity", None) | ("embedding", table)
        embed_len = 0
        for info in preprocessing_infos:
            if info["type"] == "one_hot":
                self.embed_tables.append(("one_hot", info["max_len"]))
                embed_len += info["max_len"]
            elif info["type"] == "std_normalization":
                self.embed_tables.append(("identity", None))
                embed_len += 1
            elif info["type"] == "embedding":
                key, sub = jax.random.split(key)
                table = jax.random.normal(sub, (info["max_len"], embed_dim),
                                          dtype=jnp.float32)
                self.embed_tables.append(("embedding", table))
                embed_len += embed_dim
            else:
                raise ValueError(f"Unknown preprocessing type: {info['type']}")
        self.embed_len = embed_len

        # ----- MLP parameters, stored as (in, out) -----
        def linear(k, fan_in, fan_out):
            kw, kb = jax.random.split(k)
            bound = 1.0 / jnp.sqrt(jnp.float32(fan_in))
            w = jax.random.uniform(kw, (fan_in, fan_out), jnp.float32, -bound, bound)
            b = jax.random.uniform(kb, (1, fan_out), jnp.float32, -bound, bound)
            return w, b

        key, k1, k2, k3, k4 = jax.random.split(key, 5)
        w1, b1 = linear(k1, embed_len, 128)
        w2, b2 = linear(k2, 128, 64)
        w3, b3 = linear(k3, 64, 32)
        w4, b4 = linear(k4, 32, 1)

        # Zero-pad K of fc1 to a lane-aligned multiple of 128 (rows beyond
        # embed_len are zero, so padded x columns are harmless).
        Kp = _round_up(embed_len, 128)
        w1p = jnp.zeros((Kp, 128), jnp.float32).at[:embed_len].set(w1)

        # Matmul weights in bf16 (MXU fast path); biases stay f32 (added to the
        # f32 accumulator).  w4 is stored as (1, 32) for the trans_b contraction.
        self.params = (w1p.astype(jnp.bfloat16), b1,
                       w2.astype(jnp.bfloat16), b2,
                       w3.astype(jnp.bfloat16), b3,
                       w4.T.astype(jnp.bfloat16), b4)

    def embed(self, x):
        """x: (B, length) float32; index-typed columns hold integer values."""
        batch_size = x.shape[0]
        pieces = []
        for i, (kind, payload) in enumerate(self.embed_tables):
            col = x[:, i:i + 1]                        # (B, 1)
            if kind == "one_hot":
                idx = col[:, 0].astype(jnp.int32)
                pieces.append(jax.nn.one_hot(idx, payload, dtype=jnp.float32))
            elif kind == "identity":
                pieces.append(col.astype(jnp.float32))
            else:  # embedding
                idx = col[:, 0].astype(jnp.int32)
                pieces.append(payload[idx].reshape(batch_size, -1))
        return jnp.concatenate(pieces, axis=-1)        # (B, embed_len)

    def __call__(self, x):
        embedded = self.embed(x)
        return mlp_forward(embedded, self.params)


# ----------------------------------------------------------------------------
# Demo
# ----------------------------------------------------------------------------
if __name__ == "__main__":
    preprocessing_infos = [
        {"type": "one_hot", "max_len": 10},
        {"type": "std_normalization"},
        {"type": "embedding", "max_len": 20},
    ]
    net = ParameterEmbeddingNetPallas(template_id=0,
                                      preprocessing_infos=preprocessing_infos,
                                      embed_dim=16,
                                      key=jax.random.PRNGKey(0))

    # Deterministic input: (batch=8, length=3)
    #  col 0: one-hot index in [0, 10)
    #  col 1: float feature (std_normalization / identity)
    #  col 2: embedding index in [0, 20)
    key = jax.random.PRNGKey(0)
    k0, k1, k2 = jax.random.split(key, 3)
    batch = 8
    col_onehot = jax.random.randint(k0, (batch, 1), 0, 10).astype(jnp.float32)
    col_float = jax.random.normal(k1, (batch, 1), dtype=jnp.float32)
    col_embed = jax.random.randint(k2, (batch, 1), 0, 20).astype(jnp.float32)
    x = jnp.concatenate([col_onehot, col_float, col_embed], axis=-1)  # (8, 3)

    out = net(x)
    out = jax.block_until_ready(out)
    assert out.shape == (batch, 1)
    assert bool(jnp.all((out >= 0.0) & (out <= 1.0)))

    # Pure-JAX reference mimicking the kernel's exact numerics (bf16 operands,
    # f32 accumulation) so the tolerance check is tight and robust.
    w1, b1, w2, b2, w3, b3, w4, b4 = net.params
    emb = net.embed(x)
    K = emb.shape[1]

    def bf(a):
        return a.astype(jnp.bfloat16).astype(jnp.float32)

    h = jnp.maximum(bf(emb) @ w1[:K].astype(jnp.float32) + b1, 0.0)
    h = jnp.maximum(bf(h) @ w2.astype(jnp.float32) + b2, 0.0)
    h = jnp.maximum(bf(h) @ w3.astype(jnp.float32) + b3, 0.0)
    ref = jax.nn.sigmoid(bf(h) @ w4.astype(jnp.float32).T + b4)
    assert bool(jnp.allclose(out, ref, atol=5e-3)), (out, ref)

    # Looser check against a full-f32 reference (PyTorch-semantics sanity).
    h32 = jnp.maximum(emb @ w1[:K].astype(jnp.float32) + b1, 0.0)
    h32 = jnp.maximum(h32 @ w2.astype(jnp.float32) + b2, 0.0)
    h32 = jnp.maximum(h32 @ w3.astype(jnp.float32) + b3, 0.0)
    ref32 = jax.nn.sigmoid(h32 @ w4.astype(jnp.float32).T + b4)
    assert bool(jnp.allclose(out, ref32, atol=3e-2)), (out, ref32)

    print("KERNEL_OK")
</pallas_src>

<mosaic_0001>
module attributes {stable_mosaic.version = 11 : i64} {
  func.func @_mlp_kernel(%arg0: i32, %arg1: memref<128x128xbf16, #tpu.memory_space<vmem>>, %arg2: memref<128x128xbf16, #tpu.memory_space<vmem>>, %arg3: memref<1x128xf32, #tpu.memory_space<vmem>>, %arg4: memref<128x64xbf16, #tpu.memory_space<vmem>>, %arg5: memref<1x64xf32, #tpu.memory_space<vmem>>, %arg6: memref<64x32xbf16, #tpu.memory_space<vmem>>, %arg7: memref<1x32xf32, #tpu.memory_space<vmem>>, %arg8: memref<1x32xbf16, #tpu.memory_space<vmem>>, %arg9: memref<1x1xf32, #tpu.memory_space<vmem>>, %arg10: memref<1x128xf32, #tpu.memory_space<vmem>>) attributes {dimension_semantics = [#tpu.dimension_semantics<parallel>], iteration_bounds = array<i64: 1>, scalar_prefetch = 0 : i64, scratch_operands = 0 : i64, tpu.core_type = #tpu.core_type<tc>, window_params = [{transform_indices = @transform_0, window_bounds = array<i64: 128, 128>}, {pipeline_mode = #tpu.pipeline_mode<synchronous>, transform_indices = @transform_1, window_bounds = array<i64: 128, 128>}, {pipeline_mode = #tpu.pipeline_mode<synchronous>, transform_indices = @transform_2, window_bounds = array<i64: 1, 128>}, {pipeline_mode = #tpu.pipeline_mode<synchronous>, transform_indices = @transform_3, window_bounds = array<i64: 128, 64>}, {pipeline_mode = #tpu.pipeline_mode<synchronous>, transform_indices = @transform_4, window_bounds = array<i64: 1, 64>}, {pipeline_mode = #tpu.pipeline_mode<synchronous>, transform_indices = @transform_5, window_bounds = array<i64: 64, 32>}, {pipeline_mode = #tpu.pipeline_mode<synchronous>, transform_indices = @transform_6, window_bounds = array<i64: 1, 32>}, {pipeline_mode = #tpu.pipeline_mode<synchronous>, transform_indices = @transform_7, window_bounds = array<i64: 1, 32>}, {pipeline_mode = #tpu.pipeline_mode<synchronous>, transform_indices = @transform_8, window_bounds = array<i64: 1, 1>}, {transform_indices = @transform_9, window_bounds = array<i64: 1, 128>}]} {
    %c0 = arith.constant 0 : index
    %c0_0 = arith.constant 0 : index
    %0 = vector.load %arg1[%c0, %c0_0] : memref<128x128xbf16, #tpu.memory_space<vmem>>, vector<128x128xbf16>
    %c0_1 = arith.constant 0 : index
    %c0_2 = arith.constant 0 : index
    %1 = vector.load %arg2[%c0_1, %c0_2] : memref<128x128xbf16, #tpu.memory_space<vmem>>, vector<128x128xbf16>
    %cst = arith.constant dense<0.000000e+00> : vector<128x128xf32>
    %2 = tpu.matmul %0, %1, %cst {dimension_numbers = #tpu.dot_dimension_numbers<[1], [0], [0], [1], [0, 0, 1, 1], [], []>} : vector<128x128xbf16>, vector<128x128xbf16>, vector<128x128xf32> -> vector<128x128xf32>
    %c0_3 = arith.constant 0 : index
    %c0_4 = arith.constant 0 : index
    %3 = vector.load %arg3[%c0_3, %c0_4] : memref<1x128xf32, #tpu.memory_space<vmem>>, vector<1x128xf32>
    %4 = vector.broadcast %3 : vector<1x128xf32> to vector<128x128xf32>
    %5 = arith.addf %2, %4 : vector<128x128xf32>
    %cst_5 = arith.constant 0.000000e+00 : f32
    %6 = vector.broadcast %cst_5 : f32 to vector<128x128xf32>
    %7 = arith.maximumf %5, %6 : vector<128x128xf32>
    %8 = arith.truncf %7 : vector<128x128xf32> to vector<128x128xbf16>
    %c0_6 = arith.constant 0 : index
    %c0_7 = arith.constant 0 : index
    %9 = vector.load %arg4[%c0_6, %c0_7] : memref<128x64xbf16, #tpu.memory_space<vmem>>, vector<128x64xbf16>
    %cst_8 = arith.constant dense<0.000000e+00> : vector<128x64xf32>
    %10 = tpu.matmul %8, %9, %cst_8 {dimension_numbers = #tpu.dot_dimension_numbers<[1], [0], [0], [1], [0, 0, 1, 1], [], []>} : vector<128x128xbf16>, vector<128x64xbf16>, vector<128x64xf32> -> vector<128x64xf32>
    %c0_9 = arith.constant 0 : index
    %c0_10 = arith.constant 0 : index
    %11 = vector.load %arg5[%c0_9, %c0_10] : memref<1x64xf32, #tpu.memory_space<vmem>>, vector<1x64xf32>
    %12 = vector.broadcast %11 : vector<1x64xf32> to vector<128x64xf32>
    %13 = arith.addf %10, %12 : vector<128x64xf32>
    %cst_11 = arith.constant 0.000000e+00 : f32
    %14 = vector.broadcast %cst_11 : f32 to vector<128x64xf32>
    %15 = arith.maximumf %13, %14 : vector<128x64xf32>
    %16 = arith.truncf %15 : vector<128x64xf32> to vector<128x64xbf16>
    %c0_12 = arith.constant 0 : index
    %c0_13 = arith.constant 0 : index
    %17 = vector.load %arg6[%c0_12, %c0_13] : memref<64x32xbf16, #tpu.memory_space<vmem>>, vector<64x32xbf16>
    %cst_14 = arith.constant dense<0.000000e+00> : vector<128x32xf32>
    %18 = tpu.matmul %16, %17, %cst_14 {dimension_numbers = #tpu.dot_dimension_numbers<[1], [0], [0], [1], [0, 0, 1, 1], [], []>} : vector<128x64xbf16>, vector<64x32xbf16>, vector<128x32xf32> -> vector<128x32xf32>
    %c0_15 = arith.constant 0 : index
    %c0_16 = arith.constant 0 : index
    %19 = vector.load %arg7[%c0_15, %c0_16] : memref<1x32xf32, #tpu.memory_space<vmem>>, vector<1x32xf32>
    %20 = vector.broadcast %19 : vector<1x32xf32> to vector<128x32xf32>
    %21 = arith.addf %18, %20 : vector<128x32xf32>
    %cst_17 = arith.constant 0.000000e+00 : f32
    %22 = vector.broadcast %cst_17 : f32 to vector<128x32xf32>
    %23 = arith.maximumf %21, %22 : vector<128x32xf32>
    %c0_18 = arith.constant 0 : index
    %c0_19 = arith.constant 0 : index
    %24 = vector.load %arg8[%c0_18, %c0_19] : memref<1x32xbf16, #tpu.memory_space<vmem>>, vector<1x32xbf16>
    %25 = arith.truncf %23 : vector<128x32xf32> to vector<128x32xbf16>
    %cst_20 = arith.constant dense<0.000000e+00> : vector<1x128xf32>
    %26 = tpu.matmul %24, %25, %cst_20 {dimension_numbers = #tpu.dot_dimension_numbers<[1], [1], [0], [0], [0, 0, 1, 0], [], []>} : vector<1x32xbf16>, vector<128x32xbf16>, vector<1x128xf32> -> vector<1x128xf32>
    %c0_21 = arith.constant 0 : index
    %c0_22 = arith.constant 0 : index
    %27 = vector.load %arg9[%c0_21, %c0_22] : memref<1x1xf32, #tpu.memory_space<vmem>>, vector<1x1xf32>
    %28 = vector.broadcast %27 : vector<1x1xf32> to vector<1x128xf32>
    %29 = arith.addf %26, %28 : vector<1x128xf32>
    %30 = arith.negf %29 : vector<1x128xf32>
    %31 = math.exp %30 : vector<1x128xf32>
    %cst_23 = arith.constant 1.000000e+00 : f32
    %32 = vector.broadcast %cst_23 : f32 to vector<1x128xf32>
    %33 = arith.addf %32, %31 : vector<1x128xf32>
    %34 = arith.divf %32, %33 : vector<1x128xf32>
    %c0_24 = arith.constant 0 : index
    %c0_25 = arith.constant 0 : index
    %35 = vector.load %arg10[%c0_24, %c0_25] : memref<1x128xf32, #tpu.memory_space<vmem>>, vector<1x128xf32>
    tpu.vector_store %arg10[%c0_24, %c0_25], %34 {strides = array<i32>} : memref<1x128xf32, #tpu.memory_space<vmem>>, vector<1x128xf32>,
    return
  }
  func.func @transform_0(%arg0: i32) -> (i32, i32) {
    %c0_i32 = arith.constant 0 : i32
    %c0_i32_0 = arith.constant 0 : i32
    return %arg0, %c0_i32 : i32, i32
  }
  func.func @transform_1(%arg0: i32) -> (i32, i32) {
    %c0_i32 = arith.constant 0 : i32
    %c0_i32_0 = arith.constant 0 : i32
    %c0_i32_1 = arith.constant 0 : i32
    return %c0_i32, %c0_i32_0 : i32, i32
  }
  func.func @transform_2(%arg0: i32) -> (i32, i32) {
    %c0_i32 = arith.constant 0 : i32
    %c0_i32_0 = arith.constant 0 : i32
    %c0_i32_1 = arith.constant 0 : i32
    return %c0_i32, %c0_i32_0 : i32, i32
  }
  func.func @transform_3(%arg0: i32) -> (i32, i32) {
    %c0_i32 = arith.constant 0 : i32
    %c0_i32_0 = arith.constant 0 : i32
    %c0_i32_1 = arith.constant 0 : i32
    return %c0_i32, %c0_i32_0 : i32, i32
  }
  func.func @transform_4(%arg0: i32) -> (i32, i32) {
    %c0_i32 = arith.constant 0 : i32
    %c0_i32_0 = arith.constant 0 : i32
    %c0_i32_1 = arith.constant 0 : i32
    return %c0_i32, %c0_i32_0 : i32, i32
  }
  func.func @transform_5(%arg0: i32) -> (i32, i32) {
    %c0_i32 = arith.constant 0 : i32
    %c0_i32_0 = arith.constant 0 : i32
    %c0_i32_1 = arith.constant 0 : i32
    return %c0_i32, %c0_i32_0 : i32, i32
  }
  func.func @transform_6(%arg0: i32) -> (i32, i32) {
    %c0_i32 = arith.constant 0 : i32
    %c0_i32_0 = arith.constant 0 : i32
    %c0_i32_1 = arith.constant 0 : i32
    return %c0_i32, %c0_i32_0 : i32, i32
  }
  func.func @transform_7(%arg0: i32) -> (i32, i32) {
    %c0_i32 = arith.constant 0 : i32
    %c0_i32_0 = arith.constant 0 : i32
    %c0_i32_1 = arith.constant 0 : i32
    return %c0_i32, %c0_i32_0 : i32, i32
  }
  func.func @transform_8(%arg0: i32) -> (i32, i32) {
    %c0_i32 = arith.constant 0 : i32
    %c0_i32_0 = arith.constant 0 : i32
    %c0_i32_1 = arith.constant 0 : i32
    return %c0_i32, %c0_i32_0 : i32, i32
  }
  func.func @transform_9(%arg0: i32) -> (i32, i32) {
    %c0_i32 = arith.constant 0 : i32
    %c0_i32_0 = arith.constant 0 : i32
    return %c0_i32, %arg0 : i32, i32
  }
}

</mosaic_0001>

<bundles_post_ra>
// kernel: mlp_forward.1
= control target key start
LH: loop header
LB: loop body
LE: loop exit
PB: predicated region body
PF: predicated region fallthrough
CT: control target
= control target key end

     0   :  { %vm417_vm0 = vcmask 523264   ;;  %vm523_vm1 = vcmask 261120   ;;  %s941_s1 = inlined_call_operand.vmem [shape: bf16[128,128], index: 1, kind: input, shape index: {}]   ;;  %s942_s2 = inlined_call_operand.vmem [shape: f32[1,128], index: 2, kind: input, shape index: {}]   ;;  %s943_s0 = inlined_call_operand.vmem [shape: bf16[128,128], index: 0, kind: input, shape index: {}]   ;;  %s944_s3 = inlined_call_operand.vmem [shape: bf16[128,64], index: 3, kind: input, shape index: {}]   ;;  %s945_s4 = inlined_call_operand.vmem [shape: f32[1,64], index: 4, kind: input, shape index: {}]   ;;  %s946_s5 = inlined_call_operand.vmem [shape: bf16[64,32], index: 5, kind: input, shape index: {}]   ;;  %s947_s6 = inlined_call_operand.vmem [shape: f32[1,32], index: 6, kind: input, shape index: {}]   ;;  %s948_s8 = inlined_call_operand.<no memory space> [shape: f32[1,1], index: 8, kind: input, shape index: {}]   ;;  %s949_s7 = inlined_call_operand.vmem [shape: bf16[1,32], index: 7, kind: input, shape index: {}]   ;;  %s950_s9 = inlined_call_operand.vmem [shape: f32[1,128], index: 9, kind: output, shape index: {}]  }
   0x1   :  { %v725_v0 = vld [vmem:[%s941_s1 + $0x38] sm:$0xff]  ;;  %v724_v1 = vld [vmem:[%s941_s1 + $0x30] sm:$0xff]  ;;  %v723_v2 = vld [vmem:[%s941_s1 + $0x28] sm:$0xff] }
   0x2   :  { %167 = vmatpush.bf16.msra.mxu0 %v725_v0  ;;  %v722_v3 = vld [vmem:[%s941_s1 + $0x20] sm:$0xff]  ;;  %v721_v4 = vld [vmem:[%s941_s1 + $0x18] sm:$0xff]  ;;  %v720_v5 = vld [vmem:[%s941_s1 + $0x10] sm:$0xff] }
   0x3   :  { %v719_v6 = vld [vmem:[%s941_s1 + $0x8] sm:$0xff]  ;;  %v718_v7 = vld [vmem:[%s941_s1] sm:$0xff]  ;;  %v712_v10 = vld [vmem:[%s943_s0 + $0x10] sm:$0xff] }
   0x4   :  { %v710_v8 = vld [vmem:[%s943_s0] sm:$0xff]  ;;  %v711_v9 = vld [vmem:[%s943_s0 + $0x8] sm:$0xff]  ;;  %v713_v11 = vld [vmem:[%s943_s0 + $0x18] sm:$0xff] }
   0x5   :  { %v714_v12 = vld [vmem:[%s943_s0 + $0x20] sm:$0xff]  ;;  %v733_v13 = vld [vmem:[%s944_s3 + $0x38] sm:$0xff]  ;;  %v715_v14 = vld [vmem:[%s943_s0 + $0x28] sm:$0xff] }
   0x6   :  { %168 = vmatpush.bf16.msra.mxu0 %v724_v1  ;;  %308 = vmatpush.bf16.msra.mxu1 %v733_v13  ;;  %v732_v15 = vld [vmem:[%s944_s3 + $0x30] sm:$0xff]  ;;  %v731_v16 = vld [vmem:[%s944_s3 + $0x28] sm:$0xff]  ;;  %v730_v17 = vld [vmem:[%s944_s3 + $0x20] sm:$0xff] }
   0x7   :  { %v729_v18 = vld [vmem:[%s944_s3 + $0x18] sm:$0xff]  ;;  %v716_v19 = vld [vmem:[%s943_s0 + $0x30] sm:$0xff]  ;;  %v727_v21 = vld [vmem:[%s944_s3 + $0x8] sm:$0xff] }
   0x8   :  { %v728_v20 = vld [vmem:[%s944_s3 + $0x10] sm:$0xff]  ;;  %v726_v22 = vld [vmem:[%s944_s3] sm:$0xff]  ;;  %v717_v23 = vld [vmem:[%s943_s0 + $0x38] sm:$0xff] }
   0x9   :  { %v873_v25 = vld [vmem:[%s942_s2] ss:$0 sm:$0xff]  ;;  %v735_v13 = vld [vmem:[%s946_s5 + $0x8] sm:$0xff] }
   0xa   :  { %169 = vmatpush.bf16.msra.mxu0 %v723_v2  ;;  %309 = vmatpush.bf16.msra.mxu1 %v732_v15 }
   0xe   :  { %170 = vmatpush.bf16.msra.mxu0 %v722_v3  ;;  %310 = vmatpush.bf16.msra.mxu1 %v731_v16 }
  0x12   :  { %171 = vmatpush.bf16.msra.mxu0 %v721_v4  ;;  %311 = vmatpush.bf16.msra.mxu1 %v730_v17 }
  0x16   :  { %172 = vmatpush.bf16.msra.mxu0 %v720_v5  ;;  %312 = vmatpush.bf16.msra.mxu1 %v729_v18 }
  0x1a   :  { %173 = vmatpush.bf16.msra.mxu0 %v719_v6  ;;  %313 = vmatpush.bf16.msra.mxu1 %v728_v20 }
  0x1e   :  { %174 = vmatpush.bf16.msra.mxu0 %v718_v7  ;;  %314 = vmatpush.bf16.msra.mxu1 %v727_v21  ;;  %v737_v7 = vld [vmem:[%s946_s5 + $0x18] sm:$0xff] }
  0x1f   :  { %446 = vmatpush.bf16.msra.mxu2 %v737_v7 }
  0x21   :  { %175 = vmatmul.bf16.vlgmr.msra.gmra.mxu0 %v710_v8 }
  0x22   :  { %315 = vmatpush.bf16.msra.mxu1 %v726_v22  ;;  %v741_v22 = vld [vmem:[%s945_s4] ss:$0 sm:$0xff] }
  0x31   :  { %180 = vmatmul.bf16.gmra.mxu0 %v711_v9 }
  0x41   :  { %185 = vmatmul.bf16.gmra.mxu0 %v712_v10 }
  0x51   :  { %190 = vmatmul.bf16.gmra.mxu0 %v713_v11  ;;  %v736_v11 = vld [vmem:[%s946_s5 + $0x10] sm:$0xff] }
  0x52   :  { %447 = vmatpush.bf16.msra.mxu2 %v736_v11 }
  0x56   :  { %448 = vmatpush.bf16.msra.mxu2 %v735_v13 }
  0x61   :  { %195 = vmatmul.bf16.gmra.mxu0 %v714_v12 }
  0x71   :  { %200 = vmatmul.bf16.gmra.mxu0 %v715_v14  ;;  %v734_v14 = vld [vmem:[%s946_s5] sm:$0xff] }
  0x72   :  { %449 = vmatpush.bf16.msra.mxu2 %v734_v14 }
  0x81   :  { %205 = vmatmul.bf16.gmra.mxu0 %v716_v19 }
  0x91   :  { %210 = vmatmul.bf16.gmra.mxu0 %v717_v23 }
  0x9e   :  { %v176_v24 = vpop.f32.mrf.mxu0 }
  0x9f   :  { %v177_v26 = vadd.f32 %v873_v25, %v176_v24 }
  0xa1   :  { %v216_v29 = vmax.f32 %v177_v26, 0.0 }
  0xa6   :  { %v178_v27 = vpop.f32.mrf.mxu0 }
  0xa7   :  { %v179_v28 = vadd.f32 %v873_v25, %v178_v27 }
  0xa9   :  { %v217_v30 = vmax.f32 %v179_v28, 0.0 }
  0xab   :  { %v232_v31 = vpack.c.bf16 %v217_v30, %v216_v29 }
  0xad   :  { %316 = vmatmul.bf16.vlgmr.msra.gmra.mxu1 %v232_v31 }
  0xae   :  { %v181_v32 = vpop.f32.mrf.mxu0 }
  0xaf   :  { %v182_v33 = vadd.f32 %v873_v25, %v181_v32 }
  0xb1   :  { %v218_v36 = vmax.f32 %v182_v33, 0.0 }
  0xb6   :  { %v183_v34 = vpop.f32.mrf.mxu0 }
  0xb7   :  { %v184_v35 = vadd.f32 %v873_v25, %v183_v34 }
  0xb9   :  { %v219_v37 = vmax.f32 %v184_v35, 0.0 }
  0xbb   :  { %v233_v38 = vpack.c.bf16 %v219_v37, %v218_v36 }
  0xbd   :  { %321 = vmatmul.bf16.gmra.mxu1 %v233_v38 }
  0xbe   :  { %v186_v39 = vpop.f32.mrf.mxu0 }
  0xbf   :  { %v187_v40 = vadd.f32 %v873_v25, %v186_v39 }
  0xc1   :  { %v220_v43 = vmax.f32 %v187_v40, 0.0 }
  0xc6   :  { %v188_v41 = vpop.f32.mrf.mxu0 }
  0xc7   :  { %v189_v42 = vadd.f32 %v873_v25, %v188_v41 }
  0xc9   :  { %v221_v44 = vmax.f32 %v189_v42, 0.0 }
  0xcb   :  { %v234_v45 = vpack.c.bf16 %v221_v44, %v220_v43 }
  0xcd   :  { %326 = vmatmul.bf16.gmra.mxu1 %v234_v45 }
  0xce   :  { %v191_v46 = vpop.f32.mrf.mxu0 }
  0xcf   :  { %v192_v47 = vadd.f32 %v873_v25, %v191_v46 }
  0xd1   :  { %v222_v50 = vmax.f32 %v192_v47, 0.0 }
  0xd6   :  { %v193_v48 = vpop.f32.mrf.mxu0 }
  0xd7   :  { %v194_v49 = vadd.f32 %v873_v25, %v193_v48 }
  0xd9   :  { %v223_v51 = vmax.f32 %v194_v49, 0.0 }
  0xdb   :  { %v235_v52 = vpack.c.bf16 %v223_v51, %v222_v50 }
  0xdd   :  { %331 = vmatmul.bf16.gmra.mxu1 %v235_v52 }
  0xde   :  { %v196_v53 = vpop.f32.mrf.mxu0 }
  0xdf   :  { %v197_v54 = vadd.f32 %v873_v25, %v196_v53 }
  0xe1   :  { %v224_v57 = vmax.f32 %v197_v54, 0.0 }
  0xe6   :  { %v198_v55 = vpop.f32.mrf.mxu0 }
  0xe7   :  { %v199_v56 = vadd.f32 %v873_v25, %v198_v55 }
  0xe9   :  { %v225_v58 = vmax.f32 %v199_v56, 0.0 }
  0xeb   :  { %v236_v59 = vpack.c.bf16 %v225_v58, %v224_v57 }
  0xed   :  { %336 = vmatmul.bf16.gmra.mxu1 %v236_v59 }
  0xee   :  { %v201_v60 = vpop.f32.mrf.mxu0 }
  0xef   :  { %v202_v61 = vadd.f32 %v873_v25, %v201_v60 }
  0xf1   :  { %v226_v0 = vmax.f32 %v202_v61, 0.0 }
  0xf6   :  { %v203_v62 = vpop.f32.mrf.mxu0 }
  0xf7   :  { %v204_v63 = vadd.f32 %v873_v25, %v203_v62 }
  0xf9   :  { %v227_v1 = vmax.f32 %v204_v63, 0.0 }
  0xfb   :  { %v237_v2 = vpack.c.bf16 %v227_v1, %v226_v0 }
  0xfd   :  { %341 = vmatmul.bf16.gmra.mxu1 %v237_v2 }
  0xfe   :  { %v206_v3 = vpop.f32.mrf.mxu0 }
  0xff   :  { %v207_v4 = vadd.f32 %v873_v25, %v206_v3 }
 0x101   :  { %v228_v8 = vmax.f32 %v207_v4, 0.0 }
 0x106   :  { %v208_v5 = vpop.f32.mrf.mxu0 }
 0x107   :  { %v209_v6 = vadd.f32 %v873_v25, %v208_v5 }
 0x109   :  { %v229_v9 = vmax.f32 %v209_v6, 0.0 }
 0x10b   :  { %v238_v10 = vpack.c.bf16 %v229_v9, %v228_v8 }
 0x10d   :  { %346 = vmatmul.bf16.gmra.mxu1 %v238_v10 }
 0x10e   :  { %v211_v12 = vpop.f32.mrf.mxu0 }
 0x10f   :  { %v212_v15 = vadd.f32 %v873_v25, %v211_v12 }
 0x111   :  { %v230_v18 = vmax.f32 %v212_v15, 0.0  ;;  %v742_v15 = vld [vmem:[%s947_s6] ss:$0 sm:$0xff] }
 0x116   :  { %v213_v16 = vpop.f32.mrf.mxu0 }
 0x117   :  { %v214_v17 = vadd.f32 %v873_v25, %v213_v16 }
 0x119   :  { %v231_v19 = vmax.f32 %v214_v17, 0.0 }
 0x11b   :  { %v239_v20 = vpack.c.bf16 %v231_v19, %v230_v18 }
 0x11d   :  { %351 = vmatmul.bf16.gmra.mxu1 %v239_v20 }
 0x12a   :  { %v317_v21 = vpop.f32.mrf.mxu1 }
 0x12b   :  { %v318_v23 = vadd.f32 %v741_v22, %v317_v21 }
 0x12d   :  { %v357_v27 = vmax.f32 %v318_v23, 0.0 }
 0x132   :  { %v319_v24 = vpop.f32.mrf.mxu1 }
 0x133   :  { %v320_v26 = vadd.f32 %v741_v22, %v319_v24 }
 0x135   :  { %v358_v28 = vmax.f32 %v320_v26, 0.0 }
 0x137   :  { %v373_v29 = vpack.c.bf16 %v358_v28, %v357_v27 }
 0x139   :  { %700 = vmatmul.msk.bf16.vlgmr.msra.gmra.mxu2 %vm417_vm0, %v373_v29 }
 0x13a   :  { %v322_v30 = vpop.f32.mrf.mxu1 }
 0x13b   :  { %v323_v25 = vadd.f32 %v741_v22, %v322_v30 }
 0x13d   :  { %v359_v33 = vmax.f32 %v323_v25, 0.0 }
 0x142   :  { %v324_v31 = vpop.f32.mrf.mxu1 }
 0x143   :  { %v325_v32 = vadd.f32 %v741_v22, %v324_v31 }
 0x145   :  { %v360_v34 = vmax.f32 %v325_v32, 0.0 }
 0x147   :  { %v374_v35 = vpack.c.bf16 %v360_v34, %v359_v33 }
 0x149   :  { %701 = vmatmul.msk.bf16.gmra.mxu2 %vm417_vm0, %v374_v35 }
 0x14a   :  { %v327_v36 = vpop.f32.mrf.mxu1 }
 0x14b   :  { %v328_v37 = vadd.f32 %v741_v22, %v327_v36 }
 0x14d   :  { %v361_v40 = vmax.f32 %v328_v37, 0.0 }
 0x152   :  { %v329_v38 = vpop.f32.mrf.mxu1 }
 0x153   :  { %v330_v39 = vadd.f32 %v741_v22, %v329_v38 }
 0x155   :  { %v362_v41 = vmax.f32 %v330_v39, 0.0 }
 0x157   :  { %v375_v42 = vpack.c.bf16 %v362_v41, %v361_v40 }
 0x159   :  { %702 = vmatmul.msk.bf16.gmra.mxu2 %vm417_vm0, %v375_v42 }
 0x15a   :  { %v332_v43 = vpop.f32.mrf.mxu1 }
 0x15b   :  { %v333_v44 = vadd.f32 %v741_v22, %v332_v43 }
 0x15d   :  { %v363_v47 = vmax.f32 %v333_v44, 0.0 }
 0x162   :  { %v334_v45 = vpop.f32.mrf.mxu1 }
 0x163   :  { %v335_v46 = vadd.f32 %v741_v22, %v334_v45 }
 0x165   :  { %v364_v48 = vmax.f32 %v335_v46, 0.0 }
 0x167   :  { %v376_v49 = vpack.c.bf16 %v364_v48, %v363_v47 }
 0x169   :  { %703 = vmatmul.msk.bf16.gmra.mxu2 %vm417_vm0, %v376_v49 }
 0x16a   :  { %v337_v50 = vpop.f32.mrf.mxu1 }
 0x16b   :  { %v338_v51 = vadd.f32 %v741_v22, %v337_v50 }
 0x16d   :  { %v365_v54 = vmax.f32 %v338_v51, 0.0 }
 0x172   :  { %v339_v52 = vpop.f32.mrf.mxu1 }
 0x173   :  { %v340_v53 = vadd.f32 %v741_v22, %v339_v52 }
 0x175   :  { %v366_v55 = vmax.f32 %v340_v53, 0.0 }
 0x177   :  { %v377_v56 = vpack.c.bf16 %v366_v55, %v365_v54 }
 0x179   :  { %704 = vmatmul.msk.bf16.gmra.mxu2 %vm417_vm0, %v377_v56 }
 0x17a   :  { %v342_v57 = vpop.f32.mrf.mxu1 }
 0x17b   :  { %v343_v58 = vadd.f32 %v741_v22, %v342_v57 }
 0x17d   :  { %v367_v61 = vmax.f32 %v343_v58, 0.0 }
 0x182   :  { %v344_v59 = vpop.f32.mrf.mxu1 }
 0x183   :  { %v345_v60 = vadd.f32 %v741_v22, %v344_v59 }
 0x185   :  { %v368_v62 = vmax.f32 %v345_v60, 0.0 }
 0x187   :  { %v378_v63 = vpack.c.bf16 %v368_v62, %v367_v61 }
 0x189   :  { %705 = vmatmul.msk.bf16.gmra.mxu2 %vm417_vm0, %v378_v63 }
 0x18a   :  { %v347_v0 = vpop.f32.mrf.mxu1 }
 0x18b   :  { %v348_v1 = vadd.f32 %v741_v22, %v347_v0 }
 0x18d   :  { %v369_v4 = vmax.f32 %v348_v1, 0.0 }
 0x192   :  { %v349_v2 = vpop.f32.mrf.mxu1 }
 0x193   :  { %v350_v3 = vadd.f32 %v741_v22, %v349_v2 }
 0x195   :  { %v370_v5 = vmax.f32 %v350_v3, 0.0 }
 0x197   :  { %v379_v6 = vpack.c.bf16 %v370_v5, %v369_v4 }
 0x199   :  { %706 = vmatmul.msk.bf16.gmra.mxu2 %vm417_vm0, %v379_v6 }
 0x19a   :  { %v352_v7 = vpop.f32.mrf.mxu1 }
 0x19b   :  { %v353_v8 = vadd.f32 %v741_v22, %v352_v7 }
 0x19d   :  { %v371_v11 = vmax.f32 %v353_v8, 0.0 }
 0x1a2   :  { %v354_v9 = vpop.f32.mrf.mxu1 }
 0x1a3   :  { %v355_v10 = vadd.f32 %v741_v22, %v354_v9 }
 0x1a5   :  { %v372_v12 = vmax.f32 %v355_v10, 0.0 }
 0x1a7   :  { %v380_v13 = vpack.c.bf16 %v372_v12, %v371_v11  ;;  %v14_v12 = vstv %s948_s8 }
 0x1a8   :  { %15 = vst [vmem:[#allocation2] sm:$0x1] %v14_v12 }
 0x1a9   :  { %707 = vmatmul.msk.bf16.gmra.mxu2 %vm417_vm0, %v380_v13  ;;  %v747_v13 = vmov 0  }
 0x1aa   :  { %739 = vset.pattern.permute.xlu0 %v747_v13 }
 0x1bc   :  { %v451_v14 = vpop.f32.mrf.mxu2 }
 0x1bd   :  { %v452_v16 = vadd.f32 %v742_v15, %v451_v14 }
 0x1bf   :  { %v491_v19 = vmax.f32 %v452_v16, 0.0 }
 0x1c4   :  { %v453_v17 = vpop.f32.mrf.mxu2 }
 0x1c5   :  { %v454_v18 = vadd.f32 %v742_v15, %v453_v17 }
 0x1c7   :  { %v492_v20 = vmax.f32 %v454_v18, 0.0  ;;  %v507_v18 = vld [vmem:[%s949_s7] sm:$0x1] }
 0x1c9   :  { %v917_v21 = vpack.c.bf16 %v492_v20, %v491_v19 }
 0x1cb   :  { %v528_v17 = vsel %vm523_vm1, %v917_v21, 0 }
 0x1cc   :  { %v456_v23 = vpop.f32.mrf.mxu2 }
 0x1cd   :  { %v457_v24 = vadd.f32 %v742_v15, %v456_v23 }
 0x1cf   :  { %v493_v27 = vmax.f32 %v457_v24, 0.0 }
 0x1d4   :  { %v458_v22 = vpop.f32.mrf.mxu2 }
 0x1d5   :  { %v459_v26 = vadd.f32 %v742_v15, %v458_v22 }
 0x1d7   :  { %v494_v28 = vmax.f32 %v459_v26, 0.0 }
 0x1d9   :  { %v919_v29 = vpack.c.bf16 %v494_v28, %v493_v27 }
 0x1db   :  { %v531_v16 = vsel %vm523_vm1, %v919_v29, 0 }
 0x1dc   :  { %v461_v30 = vpop.f32.mrf.mxu2 }
 0x1dd   :  { %v462_v25 = vadd.f32 %v742_v15, %v461_v30 }
 0x1df   :  { %v495_v33 = vmax.f32 %v462_v25, 0.0 }
 0x1e4   :  { %v463_v31 = vpop.f32.mrf.mxu2 }
 0x1e5   :  { %v464_v32 = vadd.f32 %v742_v15, %v463_v31 }
 0x1e7   :  { %v496_v34 = vmax.f32 %v464_v32, 0.0 }
 0x1e9   :  { %v510_v35 = vpack.c.bf16 %v496_v34, %v495_v33 }
 0x1eb   :  { %v534_v14 = vsel %vm523_vm1, %v510_v35, 0 }
 0x1ec   :  { %v466_v36 = vpop.f32.mrf.mxu2 }
 0x1ed   :  { %v467_v37 = vadd.f32 %v742_v15, %v466_v36 }
 0x1ef   :  { %v497_v40 = vmax.f32 %v467_v37, 0.0 }
 0x1f4   :  { %v468_v38 = vpop.f32.mrf.mxu2 }
 0x1f5   :  { %v469_v39 = vadd.f32 %v742_v15, %v468_v38 }
 0x1f7   :  { %v498_v41 = vmax.f32 %v469_v39, 0.0 }
 0x1f9   :  { %v511_v42 = vpack.c.bf16 %v498_v41, %v497_v40 }
 0x1fb   :  { %v537_v11 = vsel %vm523_vm1, %v511_v42, 0 }
 0x1fc   :  { %v471_v43 = vpop.f32.mrf.mxu2 }
 0x1fd   :  { %v472_v44 = vadd.f32 %v742_v15, %v471_v43 }
 0x1ff   :  { %v499_v47 = vmax.f32 %v472_v44, 0.0 }
 0x204   :  { %v473_v45 = vpop.f32.mrf.mxu2 }
 0x205   :  { %v474_v46 = vadd.f32 %v742_v15, %v473_v45 }
 0x207   :  { %v500_v48 = vmax.f32 %v474_v46, 0.0 }
 0x209   :  { %v512_v49 = vpack.c.bf16 %v500_v48, %v499_v47 }
 0x20b   :  { %v540_v10 = vsel %vm523_vm1, %v512_v49, 0 }
 0x20c   :  { %v476_v50 = vpop.f32.mrf.mxu2 }
 0x20d   :  { %v477_v4 = vadd.f32 %v742_v15, %v476_v50 }
 0x20f   :  { %v501_v7 = vmax.f32 %v477_v4, 0.0 }
 0x214   :  { %v478_v51 = vpop.f32.mrf.mxu2 }
 0x215   :  { %v479_v2 = vadd.f32 %v742_v15, %v478_v51 }
 0x217   :  { %v502_v5 = vmax.f32 %v479_v2, 0.0 }
 0x219   :  { %v513_v8 = vpack.c.bf16 %v502_v5, %v501_v7 }
 0x21b   :  { %v543_v9 = vsel %vm523_vm1, %v513_v8, 0 }
 0x21c   :  { %v481_v52 = vpop.f32.mrf.mxu2 }
 0x21d   :  { %v482_v61 = vadd.f32 %v742_v15, %v481_v52 }
 0x21f   :  { %v503_v1 = vmax.f32 %v482_v61, 0.0 }
 0x224   :  { %v483_v53 = vpop.f32.mrf.mxu2 }
 0x225   :  { %v484_v58 = vadd.f32 %v742_v15, %v483_v53 }
 0x227   :  { %v504_v63 = vmax.f32 %v484_v58, 0.0 }
 0x229   :  { %v514_v3 = vpack.c.bf16 %v504_v63, %v503_v1 }
 0x22b   :  { %v546_v6 = vsel %vm523_vm1, %v514_v3, 0 }
 0x22c   :  { %v486_v54 = vpop.f32.mrf.mxu2 }
 0x22d   :  { %v487_v55 = vadd.f32 %v742_v15, %v486_v54 }
 0x22f   :  { %v505_v59 = vmax.f32 %v487_v55, 0.0 }
 0x234   :  { %v488_v56 = vpop.f32.mrf.mxu2 }
 0x235   :  { %v489_v57 = vadd.f32 %v742_v15, %v488_v56  ;;  %v516_v15 = vld [vmem:[#allocation2] sm:$0x1] }
 0x236   :  { %519 = vperm.xlu0 %739, %v516_v15  }
 0x237   :  { %v506_v60 = vmax.f32 %v489_v57, 0.0 }
 0x239   :  { %v515_v62 = vpack.c.bf16 %v506_v60, %v505_v59 }
 0x23b   :  { %v549_v0 = vsel %vm523_vm1, %v515_v62, 0 }
 0x23c   :  { %551 = vmatpush.bf16.xpose.msra.mxu3 %v549_v0 }
 0x244   :  { %552 = vmatpush.bf16.xpose.msra.mxu3 %v546_v6 }
 0x24c   :  { %553 = vmatpush.bf16.xpose.msra.mxu3 %v543_v9 }
 0x254   :  { %554 = vmatpush.bf16.xpose.msra.mxu3 %v540_v10 }
 0x25c   :  { %555 = vmatpush.bf16.xpose.msra.mxu3 %v537_v11 }
 0x264   :  { %556 = vmatpush.bf16.xpose.msra.mxu3 %v534_v14 }
 0x26c   :  { %557 = vmatpush.bf16.xpose.msra.mxu3 %v531_v16 }
 0x274   :  { %558 = vmatpush.bf16.xpose.msra.mxu3 %v528_v17 }
 0x27b   :  { %708 = vmatmul.msk.bf16.vlgmr.msra.gmra.mxu3 %vm523_vm1, %v507_v18 }
 0x2a8   :  { %v520_v19 = vpop.permute.xlu0 %519 }
 0x2a9   :  { %v522_v20 = vperm.slane %v520_v19, 0 }
 0x2fe   :  { %v560_v23 = vpop.f32.mrf.mxu3 }
 0x2ff   :  { %v561_v24 = vadd.f32 %v560_v23, %v522_v20 }
 0x301   :  { %v709_v22 = vmul.f32 -1.442695, %v561_v24 }
 0x303   :  { %743 = vpow2.f32 %v709_v22 }
 0x306   :  { %v562_v26 = vpop.f32.mrf.mxu3 }
 0x309   :  { %v744_v27 = vpop.eup %743 }
 0x30a   :  { %v567_v28 = vadd.f32 1.0, %v744_v27 }
 0x30c   :  { %745 = vrcp.f32 %v567_v28  ;;  %v579_v25 = vand.u32 2147483648, %v567_v28  ;;  %v577_v32 = vand.u32 2147483647, %v567_v28  ;;  %vm573_vm3 = vweird.f32 %v567_v28 }
 0x30e   :  { %v580_v34 = vor.u32 1.1754944e-38, %v579_v25  ;;  %vm578_vm5 = vcmp.eq.f32.partialorder %v577_v32, 8.507059e+37 }
 0x312   :  { %v746_v29 = vpop.eup %745 }
 0x313   :  { %v569_v30 = vmul.f32 %v746_v29, %v567_v28  ;;  %vm574_vm2 = vweird.f32 %v746_v29 }
 0x314   :  { %vm575_vm4 = vmor %vm573_vm3, %vm574_vm2 }
 0x315   :  { %v570_v21 = vsub.f32 1.0, %v569_v30 }
 0x317   :  { %v571_v31 = vmul.f32 %v746_v29, %v570_v21 }
 0x319   :  { %v572_v33 = vadd.f32 %v746_v29, %v571_v31 }
 0x31b   :  { %v576_v35 = vsel %vm575_vm4, %v746_v29, %v572_v33 }
 0x31c   :  { %v581_v36 = vsel %vm578_vm5, %v580_v34, %v576_v35 }
 0x31d   :  { %583 = vst [vmem:[%s950_s9] sm:$0x1] %v581_v36 }

</bundles_post_ra>
